<compile_context>
chip_gen: v7x
topology: tpu7x:2x2x1
jax: 0.10.0
libtpu: 0.0.40
codegen_flags: <defaults>
</compile_context>

<pallas_src>
import functools

import jax
import jax.numpy as jnp
from jax.experimental import pallas as pl
from jax.experimental.pallas import tpu as pltpu


def _round_up(x, m):
    return ((x + m - 1) // m) * m


def _mlp_kernel(n_hidden, x_ref, *refs):
    """Fused MLP forward on one batch tile (feature-major layout).

    x_ref : (F_pad, TB) bf16                      -- batch on lanes
    refs  : (w1_t, b1, ..., w_nh_t, b_nh, w_out_t, b_out, out_ref)
            w_i_t  : (H_pad, prev_pad) bf16       (transposed Linear weight)
            b_i    : (H_pad, 1) f32
            w_out_t: (8, H_pad) bf16 (row 0 real)
            b_out  : (1, 1) f32
    out_ref: (1, TB) f32 sigmoid probabilities.
    """
    out_ref = refs[-1]
    params = refs[:-1]

    h = x_ref[...]                                      # (F_pad, TB) bf16
    for i in range(n_hidden):
        w_t = params[2 * i][...]                        # (H_pad, prev_pad) bf16
        b = params[2 * i + 1][...]                      # (H_pad, 1) f32
        z = jnp.dot(w_t, h, preferred_element_type=jnp.float32) + b
        h = jnp.maximum(z, 0.0).astype(jnp.bfloat16)    # ReLU; Dropout == identity

    w_out_t = params[-2][...]                           # (8, H_pad) bf16
    b_out = params[-1][...]                             # (1, 1) f32
    logits = jnp.dot(w_out_t, h, preferred_element_type=jnp.float32)  # (8, TB)
    z = logits[0:1, :] + b_out                          # only the real output row
    out_ref[...] = 1.0 / (1.0 + jnp.exp(-z))            # sigmoid in f32


def prepare_params(params, *, n_hidden):
    """One-time pad / transpose / bf16-cast of the PyTorch-style parameters.

    params: [w1 (in_f, H), b1 (1, H), ..., w_out (H, 1), b_out (1, 1)]
    (weights stored (fan_in, fan_out)).  Returns kernel-ready arrays.
    """
    in_features = params[0].shape[0]
    hidden_dim = params[0].shape[1]
    # 256-multiples once hidden_dim > 128 (v6e/v7x 256-wide MXU); 128 otherwise.
    h_pad = _round_up(hidden_dim, 256 if hidden_dim > 128 else 128)
    f_pad = _round_up(in_features, 16)   # bf16 sublane packing only, not 128

    prepared = []
    prev_p, prev = f_pad, in_features
    for i in range(n_hidden):
        w, b = params[2 * i], params[2 * i + 1]
        w_t = (jnp.zeros((h_pad, prev_p), jnp.bfloat16)
               .at[:hidden_dim, :prev].set(w.T.astype(jnp.bfloat16)))
        b_c = (jnp.zeros((h_pad, 1), jnp.float32)
               .at[:hidden_dim, 0].set(b.reshape(-1).astype(jnp.float32)))
        prepared.extend([w_t, b_c])
        prev_p, prev = h_pad, hidden_dim
    w_out, b_out = params[-2], params[-1]
    w_out_t = (jnp.zeros((8, h_pad), jnp.bfloat16)
               .at[0, :hidden_dim].set(w_out.reshape(-1).astype(jnp.bfloat16)))
    b_out_c = b_out.reshape(1, 1).astype(jnp.float32)
    prepared.extend([w_out_t, b_out_c])
    return tuple(prepared)


def _choose_batch_tiling(batch, tile_b):
    """Pick (lane tile, padded batch): 128-aligned lanes, >=2 grid steps when
    the batch is large enough (v7x megacore), minimal padded remainder."""
    bp = _round_up(batch, 128)
    if bp <= 256:
        return bp, bp                            # single small tile
    n_steps = max(2, pl.cdiv(bp, tile_b))
    tb = _round_up(pl.cdiv(bp, n_steps), 128)
    return tb, n_steps * tb


@functools.partial(jax.jit, static_argnames=("tile_b",))
def binary_classifier_forward(x, prepared, *, tile_b=1024):
    """x: (batch, input_features) f32/any. prepared: output of prepare_params.
    Returns (batch, 1) f32 sigmoid probabilities."""
    batch, in_features = x.shape
    n_hidden = (len(prepared) - 2) // 2
    h_pad, f_pad = prepared[0].shape             # w1_t is (H_pad, F_pad)

    tb, batch_pad = _choose_batch_tiling(batch, tile_b)
    grid = (batch_pad // tb,)

    # Feature-major input: (F_pad, batch_pad) bf16; tiny repack, fused by jit.
    x_t = (jnp.zeros((f_pad, batch_pad), jnp.bfloat16)
           .at[:in_features, :batch].set(x.T.astype(jnp.bfloat16)))

    # Pinned params: constant index_map -> VMEM-resident across all grid steps.
    # Single-buffer them once they are large enough for double-buffering to
    # matter for VMEM (v7x: 64 MiB physical, 32 MiB default scoped).
    param_bytes = sum(int(p.size) * p.dtype.itemsize for p in prepared)
    pin_kwargs = {"pipeline_mode": pl.Buffered(1)} if param_bytes > (4 << 20) else {}

    in_specs = [pl.BlockSpec((f_pad, tb), lambda i: (0, i))]
    for p in prepared:
        in_specs.append(pl.BlockSpec(p.shape, lambda i: (0, 0), **pin_kwargs))

    flops = 2 * batch_pad * (h_pad * f_pad
                             + max(n_hidden - 1, 0) * h_pad * h_pad
                             + 8 * h_pad)
    bytes_accessed = (x_t.size * x_t.dtype.itemsize + param_bytes + batch_pad * 4)
    cost = pl.CostEstimate(flops=flops, transcendentals=batch_pad,
                           bytes_accessed=bytes_accessed)

    out = pl.pallas_call(
        functools.partial(_mlp_kernel, n_hidden),
        grid=grid,
        in_specs=in_specs,
        out_specs=pl.BlockSpec((1, tb), lambda i: (0, i)),
        out_shape=jax.ShapeDtypeStruct((1, batch_pad), jnp.float32),
        compiler_params=pltpu.CompilerParams(
            dimension_semantics=("parallel",)),
        cost_estimate=cost,
    )(x_t, *prepared)

    return out[0, :batch].reshape(batch, 1)


def init_params(key, input_features, hidden_dim, n_hidden):
    """PyTorch-style init: U(-1/sqrt(fan_in), 1/sqrt(fan_in)).
    Weights stored (fan_in, fan_out); biases (1, fan_out)."""
    params = []
    prev = input_features
    for _ in range(n_hidden):
        key, kw, kb = jax.random.split(key, 3)
        bound = 1.0 / jnp.sqrt(prev)
        w = jax.random.uniform(kw, (prev, hidden_dim), jnp.float32, -bound, bound)
        b = jax.random.uniform(kb, (1, hidden_dim), jnp.float32, -bound, bound)
        params.extend([w, b])
        prev = hidden_dim
    key, kw, kb = jax.random.split(key, 3)
    bound = 1.0 / jnp.sqrt(prev)
    w_out = jax.random.uniform(kw, (prev, 1), jnp.float32, -bound, bound)
    b_out = jax.random.uniform(kb, (1, 1), jnp.float32, -bound, bound)
    params.extend([w_out, b_out])
    return params


def reference_forward_bf16(x, params, *, n_hidden):
    """Pure-JAX reference with the kernel's bf16-weight / f32-accumulate numerics."""
    h = x.astype(jnp.bfloat16)
    for i in range(n_hidden):
        w = params[2 * i].astype(jnp.bfloat16)
        b = params[2 * i + 1]
        z = jnp.dot(h, w, preferred_element_type=jnp.float32) + b
        h = jnp.maximum(z, 0.0).astype(jnp.bfloat16)
    logits = jnp.dot(h, params[-2].astype(jnp.bfloat16),
                     preferred_element_type=jnp.float32) + params[-1]
    return jax.nn.sigmoid(logits)


def reference_forward_f32(x, params, *, n_hidden):
    """Pure-f32 reference matching the original PyTorch module."""
    h = x
    for i in range(n_hidden):
        h = jnp.maximum(h @ params[2 * i] + params[2 * i + 1], 0.0)
    return jax.nn.sigmoid(h @ params[-2] + params[-1])


if __name__ == "__main__":
    key = jax.random.PRNGKey(0)

    batch = 8
    input_features = 4     # e.g. containment + LCS plagiarism features
    hidden_dim = 32
    n_hidden = 2

    key, kx, kp = jax.random.split(key, 3)
    x = jax.random.normal(kx, (batch, input_features), jnp.float32)
    params = init_params(kp, input_features, hidden_dim, n_hidden)

    prepared = prepare_params(params, n_hidden=n_hidden)
    out = binary_classifier_forward(x, prepared)
    out = jax.block_until_ready(out)

    assert out.shape == (batch, 1)

    # Tight check against a reference with identical bf16/f32 mixed precision.
    ref_bf16 = reference_forward_bf16(x, params, n_hidden=n_hidden)
    assert jnp.allclose(out, ref_bf16, atol=1e-4, rtol=1e-4), (
        float(jnp.max(jnp.abs(out - ref_bf16))))

    # Loose sanity check against the pure-f32 PyTorch-module semantics.
    ref_f32 = reference_forward_f32(x, params, n_hidden=n_hidden)
    assert jnp.allclose(out, ref_f32, atol=2e-2), (
        float(jnp.max(jnp.abs(out - ref_f32))))

    print("KERNEL_OK")
</pallas_src>

<mosaic_0001>
module attributes {stable_mosaic.version = 11 : i64} {
  func.func @_mlp_kernel(%arg0: i32, %arg1: memref<16x128xbf16, #tpu.memory_space<vmem>>, %arg2: memref<128x16xbf16, #tpu.memory_space<vmem>>, %arg3: memref<128x1xf32, #tpu.memory_space<vmem>>, %arg4: memref<128x128xbf16, #tpu.memory_space<vmem>>, %arg5: memref<128x1xf32, #tpu.memory_space<vmem>>, %arg6: memref<8x128xbf16, #tpu.memory_space<vmem>>, %arg7: memref<1x1xf32, #tpu.memory_space<vmem>>, %arg8: memref<1x128xf32, #tpu.memory_space<vmem>>) attributes {dimension_semantics = [#tpu.dimension_semantics<parallel>], iteration_bounds = array<i64: 1>, scalar_prefetch = 0 : i64, scratch_operands = 0 : i64, tpu.core_type = #tpu.core_type<tc>, window_params = [{transform_indices = @transform_0, window_bounds = array<i64: 16, 128>}, {pipeline_mode = #tpu.pipeline_mode<synchronous>, transform_indices = @transform_1, window_bounds = array<i64: 128, 16>}, {pipeline_mode = #tpu.pipeline_mode<synchronous>, transform_indices = @transform_2, window_bounds = array<i64: 128, 1>}, {pipeline_mode = #tpu.pipeline_mode<synchronous>, transform_indices = @transform_3, window_bounds = array<i64: 128, 128>}, {pipeline_mode = #tpu.pipeline_mode<synchronous>, transform_indices = @transform_4, window_bounds = array<i64: 128, 1>}, {pipeline_mode = #tpu.pipeline_mode<synchronous>, transform_indices = @transform_5, window_bounds = array<i64: 8, 128>}, {pipeline_mode = #tpu.pipeline_mode<synchronous>, transform_indices = @transform_6, window_bounds = array<i64: 1, 1>}, {transform_indices = @transform_7, window_bounds = array<i64: 1, 128>}]} {
    %c0 = arith.constant 0 : index
    %c0_0 = arith.constant 0 : index
    %0 = vector.load %arg1[%c0, %c0_0] : memref<16x128xbf16, #tpu.memory_space<vmem>>, vector<16x128xbf16>
    %c0_1 = arith.constant 0 : index
    %c0_2 = arith.constant 0 : index
    %1 = vector.load %arg2[%c0_1, %c0_2] : memref<128x16xbf16, #tpu.memory_space<vmem>>, vector<128x16xbf16>
    %c0_3 = arith.constant 0 : index
    %c0_4 = arith.constant 0 : index
    %2 = vector.load %arg3[%c0_3, %c0_4] : memref<128x1xf32, #tpu.memory_space<vmem>>, vector<128x1xf32>
    %cst = arith.constant dense<0.000000e+00> : vector<128x128xf32>
    %3 = tpu.matmul %1, %0, %cst {dimension_numbers = #tpu.dot_dimension_numbers<[1], [0], [0], [1], [0, 0, 1, 1], [], []>} : vector<128x16xbf16>, vector<16x128xbf16>, vector<128x128xf32> -> vector<128x128xf32>
    %4 = vector.broadcast %2 : vector<128x1xf32> to vector<128x128xf32>
    %5 = arith.addf %3, %4 : vector<128x128xf32>
    %cst_5 = arith.constant 0.000000e+00 : f32
    %6 = vector.broadcast %cst_5 : f32 to vector<128x128xf32>
    %7 = arith.maximumf %5, %6 : vector<128x128xf32>
    %8 = arith.truncf %7 : vector<128x128xf32> to vector<128x128xbf16>
    %c0_6 = arith.constant 0 : index
    %c0_7 = arith.constant 0 : index
    %9 = vector.load %arg4[%c0_6, %c0_7] : memref<128x128xbf16, #tpu.memory_space<vmem>>, vector<128x128xbf16>
    %c0_8 = arith.constant 0 : index
    %c0_9 = arith.constant 0 : index
    %10 = vector.load %arg5[%c0_8, %c0_9] : memref<128x1xf32, #tpu.memory_space<vmem>>, vector<128x1xf32>
    %cst_10 = arith.constant dense<0.000000e+00> : vector<128x128xf32>
    %11 = tpu.matmul %9, %8, %cst_10 {dimension_numbers = #tpu.dot_dimension_numbers<[1], [0], [0], [1], [0, 0, 1, 1], [], []>} : vector<128x128xbf16>, vector<128x128xbf16>, vector<128x128xf32> -> vector<128x128xf32>
    %12 = vector.broadcast %10 : vector<128x1xf32> to vector<128x128xf32>
    %13 = arith.addf %11, %12 : vector<128x128xf32>
    %cst_11 = arith.constant 0.000000e+00 : f32
    %14 = vector.broadcast %cst_11 : f32 to vector<128x128xf32>
    %15 = arith.maximumf %13, %14 : vector<128x128xf32>
    %16 = arith.truncf %15 : vector<128x128xf32> to vector<128x128xbf16>
    %c0_12 = arith.constant 0 : index
    %c0_13 = arith.constant 0 : index
    %17 = vector.load %arg6[%c0_12, %c0_13] : memref<8x128xbf16, #tpu.memory_space<vmem>>, vector<8x128xbf16>
    %c0_14 = arith.constant 0 : index
    %c0_15 = arith.constant 0 : index
    %18 = vector.load %arg7[%c0_14, %c0_15] : memref<1x1xf32, #tpu.memory_space<vmem>>, vector<1x1xf32>
    %cst_16 = arith.constant dense<0.000000e+00> : vector<8x128xf32>
    %19 = tpu.matmul %17, %16, %cst_16 {dimension_numbers = #tpu.dot_dimension_numbers<[1], [0], [0], [1], [0, 0, 1, 1], [], []>} : vector<8x128xbf16>, vector<128x128xbf16>, vector<8x128xf32> -> vector<8x128xf32>
    %20 = vector.extract_strided_slice %19 {offsets = [0, 0], sizes = [1, 128], strides = [1, 1]} : vector<8x128xf32> to vector<1x128xf32>
    %21 = vector.broadcast %18 : vector<1x1xf32> to vector<1x128xf32>
    %22 = arith.addf %20, %21 : vector<1x128xf32>
    %cst_17 = arith.constant 0.000000e+00 : f32
    %23 = vector.broadcast %cst_17 : f32 to vector<1x128xf32>
    %24 = arith.subf %23, %22 : vector<1x128xf32>
    %25 = math.exp %24 : vector<1x128xf32>
    %cst_18 = arith.constant 1.000000e+00 : f32
    %26 = vector.broadcast %cst_18 : f32 to vector<1x128xf32>
    %27 = arith.addf %26, %25 : vector<1x128xf32>
    %cst_19 = arith.constant 1.000000e+00 : f32
    %28 = vector.broadcast %cst_19 : f32 to vector<1x128xf32>
    %29 = arith.divf %28, %27 : vector<1x128xf32>
    %c0_20 = arith.constant 0 : index
    %c0_21 = arith.constant 0 : index
    %30 = vector.load %arg8[%c0_20, %c0_21] : memref<1x128xf32, #tpu.memory_space<vmem>>, vector<1x128xf32>
    tpu.vector_store %arg8[%c0_20, %c0_21], %29 {strides = array<i32>} : memref<1x128xf32, #tpu.memory_space<vmem>>, vector<1x128xf32>,
    return
  }
  func.func @transform_0(%arg0: i32) -> (i32, i32) {
    %c0_i32 = arith.constant 0 : i32
    %c0_i32_0 = arith.constant 0 : i32
    return %c0_i32, %arg0 : i32, i32
  }
  func.func @transform_1(%arg0: i32) -> (i32, i32) {
    %c0_i32 = arith.constant 0 : i32
    %c0_i32_0 = arith.constant 0 : i32
    %c0_i32_1 = arith.constant 0 : i32
    return %c0_i32, %c0_i32_0 : i32, i32
  }
  func.func @transform_2(%arg0: i32) -> (i32, i32) {
    %c0_i32 = arith.constant 0 : i32
    %c0_i32_0 = arith.constant 0 : i32
    %c0_i32_1 = arith.constant 0 : i32
    return %c0_i32, %c0_i32_0 : i32, i32
  }
  func.func @transform_3(%arg0: i32) -> (i32, i32) {
    %c0_i32 = arith.constant 0 : i32
    %c0_i32_0 = arith.constant 0 : i32
    %c0_i32_1 = arith.constant 0 : i32
    return %c0_i32, %c0_i32_0 : i32, i32
  }
  func.func @transform_4(%arg0: i32) -> (i32, i32) {
    %c0_i32 = arith.constant 0 : i32
    %c0_i32_0 = arith.constant 0 : i32
    %c0_i32_1 = arith.constant 0 : i32
    return %c0_i32, %c0_i32_0 : i32, i32
  }
  func.func @transform_5(%arg0: i32) -> (i32, i32) {
    %c0_i32 = arith.constant 0 : i32
    %c0_i32_0 = arith.constant 0 : i32
    %c0_i32_1 = arith.constant 0 : i32
    return %c0_i32, %c0_i32_0 : i32, i32
  }
  func.func @transform_6(%arg0: i32) -> (i32, i32) {
    %c0_i32 = arith.constant 0 : i32
    %c0_i32_0 = arith.constant 0 : i32
    %c0_i32_1 = arith.constant 0 : i32
    return %c0_i32, %c0_i32_0 : i32, i32
  }
  func.func @transform_7(%arg0: i32) -> (i32, i32) {
    %c0_i32 = arith.constant 0 : i32
    %c0_i32_0 = arith.constant 0 : i32
    return %c0_i32, %arg0 : i32, i32
  }
}

</mosaic_0001>

<bundles_post_ra>
// kernel: binary_classifier_forward.1
= control target key start
LH: loop header
LB: loop body
LE: loop exit
PB: predicated region body
PF: predicated region fallthrough
CT: control target
= control target key end

     0   :  { %vm189_vm0 = vcmask 130048   ;;  %v834_v1 = vmov 0   ;;  %vm836_vm1 = vmmov 0   ;;  %s1050_s0 = inlined_call_operand.vmem [shape: bf16[16,128], index: 0, kind: input, shape index: {}]   ;;  %s1051_s1 = inlined_call_operand.vmem [shape: bf16[128,16], index: 1, kind: input, shape index: {}]   ;;  %s1052_s6 = inlined_call_operand.<no memory space> [shape: f32[1,1], index: 6, kind: input, shape index: {}]   ;;  %s1053_s2 = inlined_call_operand.vmem [shape: f32[128,1], index: 2, kind: input, shape index: {}]   ;;  %s1054_s4 = inlined_call_operand.vmem [shape: f32[128,1], index: 4, kind: input, shape index: {}]   ;;  %s1055_s3 = inlined_call_operand.vmem [shape: bf16[128,128], index: 3, kind: input, shape index: {}]   ;;  %s1056_s5 = inlined_call_operand.vmem [shape: bf16[8,128], index: 5, kind: input, shape index: {}]   ;;  %s1057_s7 = inlined_call_operand.vmem [shape: f32[1,128], index: 7, kind: output, shape index: {}]  }
   0x1   :  { %v813_v0 = vld [vmem:[%s1050_s0] sm:$0xff]   ;;  %811 = vset.pattern.permute.xlu0 %v834_v1  ;;  %812 = vset.pattern.permute.xlu1 %v834_v1  ;;  %v12_v2 = vstv %s1052_s6  ;;  %v815_v4 = vld [vmem:[%s1051_s1 + $0x8] sm:$0xff]   ;;  %v816_v5 = vld [vmem:[%s1051_s1 + $0x10] sm:$0xff]  }
   0x2   :  { %v814_v3 = vld [vmem:[%s1051_s1] sm:$0xff]   ;;  %13 = vst [vmem:[#allocation2] sm:$0x1] %v12_v2  ;;  %738 = vmatprep.subr.bf16.mxu0 %v813_v0  ;;  %v48_v7 = vld [vmem:[%s1053_s2 + $0x8] sm:$0xff]  ;;  %v49_v8 = vld [vmem:[%s1053_s2 + $0x10] sm:$0xff] }
   0x3   :  { %739 = vmatpush3.bf16.msra.mxu0 %v813_v0  ;;  %740 = vmatprep.mubr.msk.bf16.mxu0 %vm189_vm0, %v814_v3  ;;  %v47_v6 = vld [vmem:[%s1053_s2] sm:$0xff]  ;;  %v817_v9 = vld [vmem:[%s1051_s1 + $0x18] sm:$0xff]   ;;  %v52_v13 = vld [vmem:[%s1053_s2 + $0x28] sm:$0xff] }
   0x4   :  { %65 = vperm.xlu0 %811, %v47_v6   ;;  %75 = vperm.xlu1 %812, %v49_v8   ;;  %v818_v10 = vld [vmem:[%s1051_s1 + $0x20] sm:$0xff]   ;;  %v50_v11 = vld [vmem:[%s1053_s2 + $0x18] sm:$0xff]  ;;  %v53_v14 = vld [vmem:[%s1053_s2 + $0x30] sm:$0xff] }
   0x5   :  { %v51_v12 = vld [vmem:[%s1053_s2 + $0x20] sm:$0xff]  ;;  %v819_v15 = vld [vmem:[%s1051_s1 + $0x28] sm:$0xff]   ;;  %v820_v16 = vld [vmem:[%s1051_s1 + $0x30] sm:$0xff]  }
   0x6   :  { %741 = vmatmul.mubr.msk.bf16.vlgmr.msra.gmra.mrb[0].mxu0 %vm189_vm0, %v815_v4  ;;  %v54_v17 = vld [vmem:[%s1053_s2 + $0x38] sm:$0xff]  ;;  %v55_v18 = vld [vmem:[%s1053_s2 + $0x40] sm:$0xff]  ;;  %v56_v19 = vld [vmem:[%s1053_s2 + $0x48] sm:$0xff] }
   0x7   :  { %744 = vmatprep.mubr.msk.bf16.mxu0 %vm189_vm0, %v816_v5  ;;  %v57_v20 = vld [vmem:[%s1053_s2 + $0x50] sm:$0xff]  ;;  %v821_v21 = vld [vmem:[%s1051_s1 + $0x38] sm:$0xff]   ;;  %v59_v23 = vld [vmem:[%s1053_s2 + $0x60] sm:$0xff] }
   0x8   :  { %70 = vperm.xlu0 %811, %v48_v7   ;;  %80 = vperm.xlu1 %812, %v50_v11   ;;  %v58_v22 = vld [vmem:[%s1053_s2 + $0x58] sm:$0xff]  ;;  %v60_v24 = vld [vmem:[%s1053_s2 + $0x68] sm:$0xff]  ;;  %v61_v25 = vld [vmem:[%s1053_s2 + $0x70] sm:$0xff] }
   0x9   :  { %v62_v26 = vld [vmem:[%s1053_s2 + $0x78] sm:$0xff]  ;;  %v351_v27 = vld [vmem:[%s1054_s4] sm:$0xff]  ;;  %v352_v28 = vld [vmem:[%s1054_s4 + $0x8] sm:$0xff] }
   0xa   :  { %v353_v29 = vld [vmem:[%s1054_s4 + $0x10] sm:$0xff]  ;;  %v354_v30 = vld [vmem:[%s1054_s4 + $0x18] sm:$0xff]  ;;  %v355_v31 = vld [vmem:[%s1054_s4 + $0x20] sm:$0xff] }
   0xb   :  { %v356_v32 = vld [vmem:[%s1054_s4 + $0x28] sm:$0xff]  ;;  %v357_v33 = vld [vmem:[%s1054_s4 + $0x30] sm:$0xff]  ;;  %v358_v34 = vld [vmem:[%s1054_s4 + $0x38] sm:$0xff] }
   0xc   :  { %85 = vperm.xlu0 %811, %v51_v12   ;;  %90 = vperm.xlu1 %812, %v52_v13   ;;  %v359_v35 = vld [vmem:[%s1054_s4 + $0x40] sm:$0xff]  ;;  %v360_v36 = vld [vmem:[%s1054_s4 + $0x48] sm:$0xff]  ;;  %v361_v37 = vld [vmem:[%s1054_s4 + $0x50] sm:$0xff] }
   0xd   :  { %v362_v38 = vld [vmem:[%s1054_s4 + $0x58] sm:$0xff]  ;;  %v363_v39 = vld [vmem:[%s1054_s4 + $0x60] sm:$0xff]  ;;  %v364_v40 = vld [vmem:[%s1054_s4 + $0x68] sm:$0xff] }
   0xe   :  { %745 = vmatmul.mubr.msk.bf16.gmra.mrb[4].mxu0 %vm189_vm0, %v817_v9  ;;  %v365_v41 = vld [vmem:[%s1054_s4 + $0x70] sm:$0xff]  ;;  %v366_v42 = vld [vmem:[%s1054_s4 + $0x78] sm:$0xff]  ;;  %v617_v43 = vld [vmem:[#allocation2] sm:$0x1] }
   0xf   :  { %748 = vmatprep.mubr.msk.bf16.mxu0 %vm189_vm0, %v818_v10  ;;  %v822_v44 = vld [vmem:[%s1055_s3] sm:$0xff]  }
  0x10   :  { %95 = vperm.xlu0 %811, %v53_v14   ;;  %100 = vperm.xlu1 %812, %v54_v17  }
  0x11   :  { %772 = vmatprep.mubr.bf16.mxu1 %v822_v44 }
  0x14   :  { %105 = vperm.xlu0 %811, %v55_v18   ;;  %110 = vperm.xlu1 %812, %v56_v19  }
  0x16   :  { %749 = vmatmul.mubr.msk.bf16.gmra.mrb[8].mxu0 %vm189_vm0, %v819_v15 }
  0x17   :  { %752 = vmatprep.mubr.msk.bf16.mxu0 %vm189_vm0, %v820_v16 }
  0x18   :  { %115 = vperm.xlu0 %811, %v57_v20   ;;  %120 = vperm.xlu1 %812, %v58_v22  }
  0x1c   :  { %125 = vperm.xlu0 %811, %v59_v23   ;;  %130 = vperm.xlu1 %812, %v60_v24  }
  0x1e   :  { %753 = vmatmul.mubr.msk.bf16.gmra.mrb[12].mxu0 %vm189_vm0, %v821_v21 }
  0x20   :  { %135 = vperm.xlu0 %811, %v61_v25   ;;  %140 = vperm.xlu1 %812, %v62_v26  }
  0x24   :  { %369 = vperm.xlu0 %811, %v351_v27   ;;  %374 = vperm.xlu1 %812, %v352_v28  }
  0x28   :  { %379 = vperm.xlu0 %811, %v353_v29   ;;  %384 = vperm.xlu1 %812, %v354_v30  }
  0x2c   :  { %389 = vperm.xlu0 %811, %v355_v31   ;;  %394 = vperm.xlu1 %812, %v356_v32  }
  0x30   :  { %399 = vperm.xlu0 %811, %v357_v33   ;;  %404 = vperm.xlu1 %812, %v358_v34  }
  0x34   :  { %409 = vperm.xlu0 %811, %v359_v35   ;;  %414 = vperm.xlu1 %812, %v360_v36  }
  0x38   :  { %419 = vperm.xlu0 %811, %v361_v37   ;;  %424 = vperm.xlu1 %812, %v362_v38  }
  0x3c   :  { %429 = vperm.xlu0 %811, %v363_v39   ;;  %434 = vperm.xlu1 %812, %v364_v40  }
  0x40   :  { %439 = vperm.xlu0 %811, %v365_v41   ;;  %444 = vperm.xlu1 %812, %v366_v42  }
  0x44   :  { %660 = vperm.xlu0 %811, %v617_v43  }
  0x83   :  { %v66_v45 = vpop.permute.xlu0 %65  ;;  %v76_v46 = vpop.permute.xlu1 %75 }
  0x87   :  { %v71_v47 = vpop.permute.xlu0 %70  ;;  %v81_v48 = vpop.permute.xlu1 %80 }
  0x8b   :  { %v86_v49 = vpop.permute.xlu0 %85  ;;  %v91_v50 = vpop.permute.xlu1 %90 }
  0x8f   :  { %v96_v51 = vpop.permute.xlu0 %95  ;;  %v101_v55 = vpop.permute.xlu1 %100 }
  0x93   :  { %v106_v63 = vpop.permute.xlu0 %105  ;;  %v111_v3 = vpop.permute.xlu1 %110 }
  0x97   :  { %v116_v12 = vpop.permute.xlu0 %115  ;;  %v121_v16 = vpop.permute.xlu1 %120 }
  0x9b   :  { %v126_v24 = vpop.permute.xlu0 %125  ;;  %v131_v29 = vpop.permute.xlu1 %130 }
  0x9f   :  { %v136_v36 = vpop.permute.xlu0 %135  ;;  %v141_v41 = vpop.permute.xlu1 %140 }
  0xd9   :  { %v742_v52 = vpop.f32.mrb[0].mxu0 }
  0xda   :  { %v257_v53 = vadd.f32 %v742_v52, %v76_v46  ;;  %v248_v54 = vpop.f32.mrb[1].mxu0 }
  0xdb   :  { %v249_v56 = vadd.f32 %v248_v54, %v66_v45  ;;  %v743_v57 = vpop.f32.mrb[2].mxu0  ;;  %v824_v54 = vld [vmem:[%s1055_s3 + $0x10] sm:$0xff]  }
  0xdc   :  { %v260_v58 = vadd.f32 %v743_v57, %v81_v48  ;;  %v251_v59 = vpop.f32.mrb[3].mxu0  ;;  %v313_v61 = vmax.f32 %v257_v53, 0.0  ;;  %v823_v53 = vld [vmem:[%s1055_s3 + $0x8] sm:$0xff]  }
  0xdd   :  { %v252_v60 = vadd.f32 %v251_v59, %v71_v47  ;;  %v311_v0 = vmax.f32 %v249_v56, 0.0  ;;  %v826_v56 = vld [vmem:[%s1055_s3 + $0x20] sm:$0xff]   ;;  %v827_v57 = vld [vmem:[%s1055_s3 + $0x28] sm:$0xff]   ;;  %v829_v59 = vld [vmem:[%s1055_s3 + $0x38] sm:$0xff]  }
  0xde   :  { %v314_v62 = vmax.f32 %v260_v58, 0.0  ;;  %v828_v58 = vld [vmem:[%s1055_s3 + $0x30] sm:$0xff]  }
  0xdf   :  { %v312_v1 = vmax.f32 %v252_v60, 0.0  ;;  %v835_v60 = vmov 0.0  }
  0xe0   :  { %v328_v2 = vpack.c.bf16 %v314_v62, %v313_v61  ;;  %788 = vmatprep.subr.bf16.mxu0 %v835_v60  ;;  %804 = vmatprep.mubr.msk.bf16.mxu0 %vm836_vm1, %v835_v60  ;;  %v370_v61 = vpop.permute.xlu0 %369  ;;  %v375_v62 = vpop.permute.xlu1 %374 }
  0xe1   :  { %v746_v4 = vpop.f32.mrb[4].mxu0  ;;  %v327_v5 = vpack.c.bf16 %v312_v1, %v311_v0 }
  0xe2   :  { %v273_v6 = vadd.f32 %v746_v4, %v96_v51  ;;  %v264_v7 = vpop.f32.mrb[5].mxu0 }
  0xe3   :  { %v265_v8 = vadd.f32 %v264_v7, %v86_v49  ;;  %v747_v9 = vpop.f32.mrb[6].mxu0  ;;  %756 = vmatprep.subr.bf16.mxu1 %v327_v5 }
  0xe4   :  { %v276_v10 = vadd.f32 %v747_v9, %v101_v55  ;;  %v267_v11 = vpop.f32.mrb[7].mxu0  ;;  %757 = vmatpush3.bf16.msra.mxu1 %v327_v5  ;;  %v317_v14 = vmax.f32 %v273_v6, 0.0  ;;  %v825_v55 = vld [vmem:[%s1055_s3 + $0x18] sm:$0xff]   ;;  %v385_v0 = vpop.permute.xlu1 %384 }
  0xe5   :  { %v268_v13 = vadd.f32 %v267_v11, %v91_v50  ;;  %758 = vmatprep.subr.bf16.mxu1 %v328_v2  ;;  %v315_v17 = vmax.f32 %v265_v8, 0.0 }
  0xe6   :  { %v318_v15 = vmax.f32 %v276_v10, 0.0 }
  0xe7   :  { %v316_v18 = vmax.f32 %v268_v13, 0.0 }
  0xe8   :  { %v330_v19 = vpack.c.bf16 %v318_v15, %v317_v14  ;;  %759 = vmatpush3.bf16.msra.mxu1 %v328_v2  ;;  %v395_v2 = vpop.permute.xlu1 %394 }
  0xe9   :  { %v329_v20 = vpack.c.bf16 %v316_v18, %v315_v17  ;;  %v750_v21 = vpop.f32.mrb[8].mxu0 }
  0xea   :  { %v289_v22 = vadd.f32 %v750_v21, %v116_v12  ;;  %v280_v23 = vpop.f32.mrb[9].mxu0 }
  0xeb   :  { %v281_v25 = vadd.f32 %v280_v23, %v106_v63  ;;  %v751_v26 = vpop.f32.mrb[10].mxu0  ;;  %760 = vmatprep.subr.bf16.mxu1 %v329_v20  ;;  %v380_v63 = vpop.permute.xlu0 %379 }
  0xec   :  { %v292_v27 = vadd.f32 %v751_v26, %v121_v16  ;;  %v283_v28 = vpop.f32.mrb[11].mxu0  ;;  %761 = vmatpush3.bf16.msra.mxu1 %v329_v20  ;;  %v321_v31 = vmax.f32 %v289_v22, 0.0  ;;  %v405_v7 = vpop.permute.xlu1 %404 }
  0xed   :  { %v284_v30 = vadd.f32 %v283_v28, %v111_v3  ;;  %762 = vmatprep.subr.bf16.mxu1 %v330_v19  ;;  %v319_v33 = vmax.f32 %v281_v25, 0.0 }
  0xee   :  { %v322_v32 = vmax.f32 %v292_v27, 0.0 }
  0xef   :  { %v320_v34 = vmax.f32 %v284_v30, 0.0  ;;  %v390_v1 = vpop.permute.xlu0 %389 }
  0xf0   :  { %v332_v35 = vpack.c.bf16 %v322_v32, %v321_v31  ;;  %763 = vmatpush3.bf16.msra.mxu1 %v330_v19  ;;  %v415_v19 = vpop.permute.xlu1 %414 }
  0xf1   :  { %v331_v37 = vpack.c.bf16 %v320_v34, %v319_v33  ;;  %v754_v38 = vpop.f32.mrb[12].mxu0 }
  0xf2   :  { %v305_v39 = vadd.f32 %v754_v38, %v136_v36  ;;  %v296_v40 = vpop.f32.mrb[13].mxu0 }
  0xf3   :  { %v297_v42 = vadd.f32 %v296_v40, %v126_v24  ;;  %v755_v43 = vpop.f32.mrb[14].mxu0  ;;  %764 = vmatprep.subr.bf16.mxu1 %v331_v37  ;;  %v400_v3 = vpop.permute.xlu0 %399 }
  0xf4   :  { %v308_v44 = vadd.f32 %v755_v43, %v141_v41  ;;  %v299_v45 = vpop.f32.mrb[15].mxu0  ;;  %765 = vmatpush3.bf16.msra.mxu1 %v331_v37  ;;  %v325_v47 = vmax.f32 %v305_v39, 0.0  ;;  %v425_v32 = vpop.permute.xlu1 %424 }
  0xf5   :  { %v300_v46 = vadd.f32 %v299_v45, %v131_v29  ;;  %766 = vmatprep.subr.bf16.mxu1 %v332_v35  ;;  %v323_v49 = vmax.f32 %v297_v42, 0.0 }
  0xf6   :  { %v326_v48 = vmax.f32 %v308_v44, 0.0 }
  0xf7   :  { %v324_v50 = vmax.f32 %v300_v46, 0.0  ;;  %v410_v15 = vpop.permute.xlu0 %409 }
  0xf8   :  { %v334_v51 = vpack.c.bf16 %v326_v48, %v325_v47  ;;  %767 = vmatpush3.bf16.msra.mxu1 %v332_v35  ;;  %v435_v45 = vpop.permute.xlu1 %434 }
  0xf9   :  { %v333_v52 = vpack.c.bf16 %v324_v50, %v323_v49 }
  0xfb   :  { %768 = vmatprep.subr.bf16.mxu1 %v333_v52  ;;  %v420_v28 = vpop.permute.xlu0 %419 }
  0xfc   :  { %769 = vmatpush3.bf16.msra.mxu1 %v333_v52 }
  0xfd   :  { %770 = vmatprep.subr.bf16.mxu1 %v334_v51 }
  0xff   :  { %v430_v40 = vpop.permute.xlu0 %429 }
 0x100   :  { %771 = vmatpush3.bf16.msra.mxu1 %v334_v51 }
 0x103   :  { %773 = vmatmul.mubr.bf16.vlgmr.msra.gmra.mrb[0].mxu1 %v823_v53  ;;  %v440_v52 = vpop.permute.xlu0 %439 }
 0x104   :  { %776 = vmatprep.mubr.bf16.mxu1 %v824_v54 }
 0x10b   :  { %777 = vmatmul.mubr.bf16.gmra.mrb[4].mxu1 %v825_v55 }
 0x10c   :  { %780 = vmatprep.mubr.bf16.mxu1 %v826_v56 }
 0x113   :  { %781 = vmatmul.mubr.bf16.gmra.mrb[8].mxu1 %v827_v57  ;;  %v445_v57 = vpop.permute.xlu1 %444 }
 0x114   :  { %784 = vmatprep.mubr.bf16.mxu1 %v828_v58 }
 0x11b   :  { %785 = vmatmul.mubr.bf16.gmra.mrb[12].mxu1 %v829_v59 }
 0x1d6   :  { %v774_v4 = vpop.f32.mrb[0].mxu1 }
 0x1d7   :  { %v538_v5 = vadd.f32 %v774_v4, %v380_v63  ;;  %v529_v6 = vpop.f32.mrb[1].mxu1 }
 0x1d8   :  { %v530_v8 = vadd.f32 %v529_v6, %v370_v61  ;;  %v775_v9 = vpop.f32.mrb[2].mxu1  ;;  %v616_v6 = vld [vmem:[%s1056_s5] sm:$0xf] }
 0x1d9   :  { %v541_v10 = vadd.f32 %v775_v9, %v385_v0  ;;  %v532_v11 = vpop.f32.mrb[3].mxu1  ;;  %v594_v13 = vmax.f32 %v538_v5, 0.0 }
 0x1da   :  { %v533_v12 = vadd.f32 %v532_v11, %v375_v62  ;;  %v592_v16 = vmax.f32 %v530_v8, 0.0 }
 0x1db   :  { %v595_v14 = vmax.f32 %v541_v10, 0.0  ;;  %v661_v10 = vpop.permute.xlu0 %660 }
 0x1dc   :  { %v593_v17 = vmax.f32 %v533_v12, 0.0 }
 0x1dd   :  { %v609_v18 = vpack.c.bf16 %v595_v14, %v594_v13 }
 0x1de   :  { %v608_v20 = vpack.c.bf16 %v593_v17, %v592_v16  ;;  %v778_v21 = vpop.f32.mrb[4].mxu1 }
 0x1df   :  { %v554_v22 = vadd.f32 %v778_v21, %v400_v3  ;;  %v545_v23 = vpop.f32.mrb[5].mxu1 }
 0x1e0   :  { %v546_v24 = vadd.f32 %v545_v23, %v390_v1  ;;  %v779_v25 = vpop.f32.mrb[6].mxu1  ;;  %789 = vmatpush3.bf16.msra.mxu0 %v608_v20 }
 0x1e1   :  { %v557_v26 = vadd.f32 %v779_v25, %v405_v7  ;;  %v548_v27 = vpop.f32.mrb[7].mxu1  ;;  %790 = vmatprep.subr.bf16.mxu0 %v835_v60  ;;  %v598_v30 = vmax.f32 %v554_v22, 0.0  ;;  %v663_v7 = vlaneseq }
 0x1e2   :  { %v549_v29 = vadd.f32 %v548_v27, %v395_v2  ;;  %v596_v33 = vmax.f32 %v546_v24, 0.0 }
 0x1e3   :  { %v599_v31 = vmax.f32 %v557_v26, 0.0  ;;  %v664_v8 = vshrl.u32 %v663_v7, 7 }
 0x1e4   :  { %v597_v34 = vmax.f32 %v549_v29, 0.0  ;;  %791 = vmatpush3.bf16.msra.mxu0 %v609_v18 }
 0x1e5   :  { %v611_v35 = vpack.c.bf16 %v599_v31, %v598_v30  ;;  %792 = vmatprep.subr.bf16.mxu0 %v835_v60  ;;  %v665_v9 = vsub.s32 0, %v664_v8 }
 0x1e6   :  { %v610_v36 = vpack.c.bf16 %v597_v34, %v596_v33  ;;  %v782_v37 = vpop.f32.mrb[8].mxu1 }
 0x1e7   :  { %v570_v38 = vadd.f32 %v782_v37, %v420_v28  ;;  %v561_v39 = vpop.f32.mrb[9].mxu1  ;;  %v666_v11 = vrot.slane %v661_v10, %v665_v9 }
 0x1e8   :  { %v562_v41 = vadd.f32 %v561_v39, %v410_v15  ;;  %v783_v42 = vpop.f32.mrb[10].mxu1  ;;  %793 = vmatpush3.bf16.msra.mxu0 %v610_v36 }
 0x1e9   :  { %v573_v43 = vadd.f32 %v783_v42, %v425_v32  ;;  %v564_v44 = vpop.f32.mrb[11].mxu1  ;;  %794 = vmatprep.subr.bf16.mxu0 %v835_v60  ;;  %v602_v47 = vmax.f32 %v570_v38, 0.0 }
 0x1ea   :  { %v565_v46 = vadd.f32 %v564_v44, %v415_v19  ;;  %v600_v49 = vmax.f32 %v562_v41, 0.0 }
 0x1eb   :  { %v603_v48 = vmax.f32 %v573_v43, 0.0 }
 0x1ec   :  { %v601_v50 = vmax.f32 %v565_v46, 0.0  ;;  %795 = vmatpush3.bf16.msra.mxu0 %v611_v35 }
 0x1ed   :  { %v613_v51 = vpack.c.bf16 %v603_v48, %v602_v47  ;;  %796 = vmatprep.subr.bf16.mxu0 %v835_v60 }
 0x1ee   :  { %v612_v53 = vpack.c.bf16 %v601_v50, %v600_v49  ;;  %v786_v54 = vpop.f32.mrb[12].mxu1 }
 0x1ef   :  { %v586_v55 = vadd.f32 %v786_v54, %v440_v52  ;;  %v577_v56 = vpop.f32.mrb[13].mxu1 }
 0x1f0   :  { %v578_v58 = vadd.f32 %v577_v56, %v430_v40  ;;  %v787_v59 = vpop.f32.mrb[14].mxu1  ;;  %797 = vmatpush3.bf16.msra.mxu0 %v612_v53 }
 0x1f1   :  { %v589_v61 = vadd.f32 %v787_v59, %v445_v57  ;;  %v580_v62 = vpop.f32.mrb[15].mxu1  ;;  %798 = vmatprep.subr.bf16.mxu0 %v835_v60  ;;  %v606_v0 = vmax.f32 %v586_v55, 0.0 }
 0x1f2   :  { %v581_v63 = vadd.f32 %v580_v62, %v435_v45  ;;  %v604_v2 = vmax.f32 %v578_v58, 0.0 }
 0x1f3   :  { %v607_v1 = vmax.f32 %v589_v61, 0.0 }
 0x1f4   :  { %v605_v3 = vmax.f32 %v581_v63, 0.0  ;;  %799 = vmatpush3.bf16.msra.mxu0 %v613_v51 }
 0x1f5   :  { %v615_v4 = vpack.c.bf16 %v607_v1, %v606_v0  ;;  %800 = vmatprep.subr.bf16.mxu0 %v835_v60 }
 0x1f6   :  { %v614_v5 = vpack.c.bf16 %v605_v3, %v604_v2 }
 0x1f8   :  { %801 = vmatpush3.bf16.msra.mxu0 %v614_v5 }
 0x1f9   :  { %802 = vmatprep.subr.bf16.mxu0 %v835_v60 }
 0x1fc   :  { %803 = vmatpush3.bf16.msra.mxu0 %v615_v4 }
 0x1ff   :  { %805 = vmatmul.mubr.bf16.vlgmr.msra.gmra.mrb[16].mxu0 %v616_v6 }
 0x2d2   :  { %v652_v12 = vpop.f32.mrb[16].mxu0 }
 0x2d3   :  { %v667_v13 = vadd.f32 %v666_v11, %v652_v12  ;;  %v806_v14 = vpop.f32.mrb[17].mxu0 }
 0x2d4   :  { %v655_v15 = vpop.f32.mrb[18].mxu0 }
 0x2d5   :  { %v668_v16 = vsub.f32 0.0, %v667_v13  ;;  %v807_v17 = vpop.f32.mrb[19].mxu0 }
 0x2d7   :  { %v669_v18 = vmul.f32 1.442695, %v668_v16 }
 0x2d9   :  { %830 = vpow2.f32 %v669_v18 }
 0x2e3   :  { %v831_v60 = vpop.eup %830 }
 0x2e4   :  { %v671_v19 = vadd.f32 1.0, %v831_v60 }
 0x2e6   :  { %832 = vrcp.f32 %v671_v19 }
 0x2f0   :  { %v833_v20 = vpop.eup %832 }
 0x2f1   :  { %674 = vst [vmem:[%s1057_s7] sm:$0x1] %v833_v20 }

</bundles_post_ra>
